<compile_context>
chip_gen: v6e
topology: v6e:2x2x1
jax: 0.10.0
libtpu: 0.0.40
codegen_flags: <defaults>
</compile_context>

<pallas_src>
import functools

import jax
import jax.numpy as jnp
from jax.experimental import pallas as pl
from jax.experimental.pallas import tpu as pltpu


def _round_up(x: int, m: int) -> int:
    return (x + m - 1) // m * m


def _patch_embed_kernel(x_ref, w_ref, b_ref, o_ref):
    # x_ref: (tm, K) bf16 patch rows, w_ref: (K, tn) bf16, b_ref: (1, tn) f32,
    # o_ref: (tm, tn).  K is not split -> single MXU pass, no accumulator or
    # pl.when init/finalize needed.  Bias add stays on the f32 accumulator
    # (v5e has no bf16 VPU), cast happens once at the store.
    acc = jnp.dot(x_ref[...], w_ref[...], preferred_element_type=jnp.float32)
    o_ref[...] = (acc + b_ref[...]).astype(o_ref.dtype)


@functools.partial(jax.jit, static_argnames=("patch_size",))
def patch_embedding(x, weight, bias, *, patch_size: int):
    """x: (B, C, H, W) NCHW like PyTorch.  weight: (E, C, P, P) Conv2d weight.
    bias: (E,).  Returns (B, num_patches, E), matching PatchEmbedding.forward."""
    B, C, H, W = x.shape
    P = patch_size
    assert H % P == 0 and W % P == 0, "Input image size must be divisible by patch size"
    E = weight.shape[0]
    nH, nW = H // P, W // P
    n_patches = nH * nW

    # --- glue: extract non-overlapping patches, flatten in (C, ph, pw) order ---
    patches = x.reshape(B, C, nH, P, nW, P)
    patches = patches.transpose(0, 2, 4, 1, 3, 5)            # (B, nH, nW, C, P, P)
    patches = patches.reshape(B * n_patches, C * P * P)      # (M, K)

    # --- glue: conv weight -> dense projection matrix ---
    w_mat = weight.reshape(E, C * P * P).T                   # (K, E)

    M, K = patches.shape

    # bf16 operands hit MXU peak and halve streamed DMA bytes; accumulate in f32.
    patches_bf = patches.astype(jnp.bfloat16)
    w_bf = w_mat.astype(jnp.bfloat16)

    # Tile sizes: stream M in modest tiles (fits the 32 MiB scoped-VMEM default
    # on every generation, including v7x's 64 MiB VMEM); keep the output /
    # weight last dim a multiple of 128 so stores are unmasked, lane-dense vst.
    tm = min(512, _round_up(M, 8))
    tn = 256 if E >= 256 else 128
    M_pad = _round_up(M, tm)
    E_pad = _round_up(E, tn)

    if M_pad != M:
        patches_bf = jnp.pad(patches_bf, ((0, M_pad - M), (0, 0)))
    if E_pad != E:
        w_bf = jnp.pad(w_bf, ((0, 0), (0, E_pad - E)))
        bias = jnp.pad(bias, (0, E_pad - E))
    b_mat = bias.astype(jnp.float32).reshape(1, E_pad)

    grid = (M_pad // tm, E_pad // tn)
    out_dtype = x.dtype

    cost = pl.CostEstimate(
        flops=2 * M_pad * K * E_pad,
        transcendentals=0,
        bytes_accessed=(M_pad * K * 2                      # streamed bf16 patches
                        + grid[0] * K * E_pad * 2          # weight tiles (re-read per M tile)
                        + M_pad * E_pad * jnp.dtype(out_dtype).itemsize),
    )

    out = pl.pallas_call(
        _patch_embed_kernel,
        out_shape=jax.ShapeDtypeStruct((M_pad, E_pad), out_dtype),
        grid_spec=pl.GridSpec(
            grid=grid,
            in_specs=[
                pl.BlockSpec((tm, K), lambda i, j: (i, 0)),   # patch rows stream over i
                pl.BlockSpec((K, tn), lambda i, j: (0, j)),   # weight tile resident per j
                pl.BlockSpec((1, tn), lambda i, j: (0, j)),   # bias tile resident per j
            ],
            out_specs=pl.BlockSpec((tm, tn), lambda i, j: (i, j)),
        ),
        compiler_params=pltpu.CompilerParams(
            dimension_semantics=("parallel", "parallel")),
        cost_estimate=cost,
    )(patches_bf, w_bf, b_mat)

    return out[:M, :E].reshape(B, n_patches, E)


if __name__ == "__main__":
    # Small shapes consistent with the module's forward semantics.
    B, C, H, W = 2, 3, 16, 16
    patch_size = 8
    embedding_dim = 32

    key = jax.random.PRNGKey(0)
    kx, kw, kb = jax.random.split(key, 3)

    x = jax.random.normal(kx, (B, C, H, W), dtype=jnp.float32)
    # Deterministic synthetic "Conv2d" parameters (not a checkpoint).
    weight = jax.random.normal(kw, (embedding_dim, C, patch_size, patch_size),
                               dtype=jnp.float32) * 0.02
    bias = jax.random.normal(kb, (embedding_dim,), dtype=jnp.float32) * 0.02

    out = patch_embedding(x, weight, bias, patch_size=patch_size)
    out = jax.block_until_ready(out)

    # Reference in plain JAX with the same bf16 operand rounding + f32 accumulation.
    nH, nW = H // patch_size, W // patch_size
    ref_patches = x.reshape(B, C, nH, patch_size, nW, patch_size)
    ref_patches = ref_patches.transpose(0, 2, 4, 1, 3, 5).reshape(
        B * nH * nW, C * patch_size * patch_size)
    p32 = ref_patches.astype(jnp.bfloat16).astype(jnp.float32)
    w32 = weight.reshape(embedding_dim, -1).astype(jnp.bfloat16).astype(jnp.float32)
    ref = (p32 @ w32.T + bias).reshape(B, nH * nW, embedding_dim)

    assert out.shape == (B, nH * nW, embedding_dim)
    assert out.dtype == x.dtype
    assert jnp.allclose(out, ref, atol=2e-3, rtol=2e-3)

    print("KERNEL_OK")
</pallas_src>

<mosaic_0001>
module attributes {stable_mosaic.version = 11 : i64} {
  func.func @_patch_embed_kernel(%arg0: i32, %arg1: i32, %arg2: memref<8x192xbf16, #tpu.memory_space<vmem>>, %arg3: memref<192x128xbf16, #tpu.memory_space<vmem>>, %arg4: memref<1x128xf32, #tpu.memory_space<vmem>>, %arg5: memref<8x128xf32, #tpu.memory_space<vmem>>) attributes {dimension_semantics = [#tpu.dimension_semantics<parallel>, #tpu.dimension_semantics<parallel>], iteration_bounds = array<i64: 1, 1>, scalar_prefetch = 0 : i64, scratch_operands = 0 : i64, tpu.core_type = #tpu.core_type<tc>, window_params = [{transform_indices = @transform_0, window_bounds = array<i64: 8, 192>}, {transform_indices = @transform_1, window_bounds = array<i64: 192, 128>}, {transform_indices = @transform_2, window_bounds = array<i64: 1, 128>}, {transform_indices = @transform_3, window_bounds = array<i64: 8, 128>}]} {
    %c0 = arith.constant 0 : index
    %c0_0 = arith.constant 0 : index
    %0 = vector.load %arg2[%c0, %c0_0] : memref<8x192xbf16, #tpu.memory_space<vmem>>, vector<8x192xbf16>
    %c0_1 = arith.constant 0 : index
    %c0_2 = arith.constant 0 : index
    %1 = vector.load %arg3[%c0_1, %c0_2] : memref<192x128xbf16, #tpu.memory_space<vmem>>, vector<192x128xbf16>
    %cst = arith.constant dense<0.000000e+00> : vector<8x128xf32>
    %2 = tpu.matmul %0, %1, %cst {dimension_numbers = #tpu.dot_dimension_numbers<[1], [0], [0], [1], [0, 0, 1, 1], [], []>} : vector<8x192xbf16>, vector<192x128xbf16>, vector<8x128xf32> -> vector<8x128xf32>
    %c0_3 = arith.constant 0 : index
    %c0_4 = arith.constant 0 : index
    %3 = vector.load %arg4[%c0_3, %c0_4] : memref<1x128xf32, #tpu.memory_space<vmem>>, vector<1x128xf32>
    %4 = vector.broadcast %3 : vector<1x128xf32> to vector<8x128xf32>
    %5 = arith.addf %2, %4 : vector<8x128xf32>
    %c0_5 = arith.constant 0 : index
    %c0_6 = arith.constant 0 : index
    %6 = vector.load %arg5[%c0_5, %c0_6] : memref<8x128xf32, #tpu.memory_space<vmem>>, vector<8x128xf32>
    tpu.vector_store %arg5[%c0_5, %c0_6], %5 {strides = array<i32>} : memref<8x128xf32, #tpu.memory_space<vmem>>, vector<8x128xf32>,
    return
  }
  func.func @transform_0(%arg0: i32, %arg1: i32) -> (i32, i32) {
    %c0_i32 = arith.constant 0 : i32
    %c0_i32_0 = arith.constant 0 : i32
    return %arg0, %c0_i32 : i32, i32
  }
  func.func @transform_1(%arg0: i32, %arg1: i32) -> (i32, i32) {
    %c0_i32 = arith.constant 0 : i32
    %c0_i32_0 = arith.constant 0 : i32
    return %c0_i32, %arg1 : i32, i32
  }
  func.func @transform_2(%arg0: i32, %arg1: i32) -> (i32, i32) {
    %c0_i32 = arith.constant 0 : i32
    %c0_i32_0 = arith.constant 0 : i32
    return %c0_i32, %arg1 : i32, i32
  }
  func.func @transform_3(%arg0: i32, %arg1: i32) -> (i32, i32) {
    %c0_i32 = arith.constant 0 : i32
    return %arg0, %arg1 : i32, i32
  }
}

</mosaic_0001>

<bundles_post_ra>
// kernel: patch_embedding.1
= control target key start
LH: loop header
LB: loop body
LE: loop exit
PB: predicated region body
PF: predicated region fallthrough
CT: control target
= control target key end

     0   :  { %v239_v1 = vmov 0   ;;  %vm126_vm0 = vcmask 523264   ;;  %s306_s0 = inlined_call_operand.vmem [shape: bf16[8,192], index: 0, kind: input, shape index: {}]   ;;  %s307_s1 = inlined_call_operand.vmem [shape: bf16[192,128], index: 1, kind: input, shape index: {}]   ;;  %s308_s2 = inlined_call_operand.vmem [shape: f32[1,128], index: 2, kind: input, shape index: {}]   ;;  %s309_s3 = inlined_call_operand.hbm [shape: f32[8,128], index: 3, kind: output, shape index: {}]  }
   0x1   :  { %v203_v0 = vld [vmem:[%s307_s1 + $0x38] sm:$0xff]   ;;  %130 = vmatprep.subr.bf16.mxu0 %v239_v1  ;;  %v204_v2 = vld [vmem:[%s307_s1 + $0x30] sm:$0xff]   ;;  %v205_v3 = vld [vmem:[%s307_s1 + $0x28] sm:$0xff]  }
   0x2   :  { %131 = vmatpush1.bf16.msra.mxu0 %v203_v0  ;;  %v206_v4 = vld [vmem:[%s307_s1 + $0x20] sm:$0xff]  }
   0x3   :  { %132 = vmatprep.subr.bf16.mxu0 %v239_v1  ;;  %v16_v5 = vld [vmem:[%s306_s0] sm:$0xff] }
   0x6   :  { %133 = vmatpush1.bf16.msra.mxu0 %v204_v2 }
   0x7   :  { %134 = vmatprep.subr.bf16.mxu0 %v239_v1 }
   0xa   :  { %135 = vmatpush1.bf16.msra.mxu0 %v205_v3 }
   0xb   :  { %136 = vmatprep.subr.bf16.mxu0 %v239_v1 }
   0xc   :  { %8 = vsyncpa [#allocation3], 0  ;;  %v187_v6 = vcombine.high %v16_v5, %v16_v5  ;;  %v207_v7 = vld [vmem:[%s307_s1 + $0x18] sm:$0xff]   ;;  %v208_v8 = vld [vmem:[%s307_s1 + $0x10] sm:$0xff]   ;;  %v186_v15 = vcombine.low %v16_v5, %v16_v5  ;;  %s240_s12 = smov [#allocation2]  }
   0xd   :  { %v209_v9 = vld [vmem:[%s307_s1 + $0x8] sm:$0xff]   ;;  %v210_v10 = vld [vmem:[%s307_s1] sm:$0xff]   ;;  %v211_v11 = vld [vmem:[%s307_s1 + $0x58] sm:$0xff]   ;;  %s177_s13 = sshll.u32 %s240_s12, 4  ;;  %s178_s13 = int_to_ptr.vmem [resolvable:$true] %s177_s13 }
   0xe   :  { %137 = vmatpush1.bf16.msra.mxu0 %v206_v4  ;;  %200 = vmatprep.mubr.msk.bf16.mxu0 %vm126_vm0, %v187_v6  ;;  %v212_v12 = vld [vmem:[%s307_s1 + $0x50] sm:$0xff]   ;;  %v213_v13 = vld [vmem:[%s307_s1 + $0x48] sm:$0xff]   ;;  %v214_v14 = vld [vmem:[%s307_s1 + $0x40] sm:$0xff]   ;;  %s217_s14 = scalar_lea.vmem %s178_s13, 128  ;;  %p222_p1 = scmp.lt.s32.totalorder %s178_s13, %s178_s13 }
   0xf   :  { %138 = vmatprep.subr.bf16.mxu0 %v239_v1  ;;  %v185_v16 = vld [vmem:[%s308_s2] ss:$0 sm:$0xff]  ;;  %p218_p0 = scmp.ne.s32.totalorder %s178_s13, %s217_s14  ;;  %p223_p2 = scmp.lt.s32.totalorder %s217_s14, %s217_s14 }
  0x11   :  { %p224_p3 = por %p223_p2, %p222_p1 }
  0x12   :  { %139 = vmatpush1.bf16.msra.mxu0 %v207_v7 }
  0x13   :  { %140 = vmatprep.subr.bf16.mxu0 %v239_v1  ;;  %p225_p4 = pnand %p224_p3, %p218_p0 }
  0x16   :  { %141 = vmatpush1.bf16.msra.mxu0 %v208_v8 }
  0x17   :  { %142 = vmatprep.subr.bf16.mxu0 %v239_v1 }
  0x1a   :  { %143 = vmatpush1.bf16.msra.mxu0 %v209_v9 }
  0x1b   :  { %144 = vmatprep.subr.bf16.mxu0 %v239_v1 }
  0x1e   :  { %145 = vmatpush1.bf16.msra.mxu0 %v210_v10 }
  0x1f   :  { %154 = vmatprep.subr.bf16.mxu0 %v239_v1 }
  0x22   :  { %155 = vmatpush2.bf16.msra.mxu0 %v211_v11 }
  0x23   :  { %156 = vmatprep.subr.bf16.mxu0 %v239_v1 }
  0x26   :  { %157 = vmatpush2.bf16.msra.mxu0 %v212_v12 }
  0x27   :  { %158 = vmatprep.subr.bf16.mxu0 %v239_v1 }
  0x2a   :  { %159 = vmatpush2.bf16.msra.mxu0 %v213_v13 }
  0x2b   :  { %160 = vmatprep.subr.bf16.mxu0 %v239_v1 }
  0x2e   :  { %161 = vmatpush2.bf16.msra.mxu0 %v214_v14 }
  0x31   :  { %163 = vmatmul.mubr.bf16.vlgmr.msra.gmra.mxu0 %v186_v15 }
  0xf1   :  { %v164_v17 = vpop.f32.mrf.mxu0 }
  0xf2   :  { %v165_v18 = vadd.f32 %v185_v16, %v164_v17 }
  0xf3   :  { %v166_v19 = vpop.f32.mrf.mxu0 }
  0xf4   :  { %170 = vst [vmem:[#allocation2] sm:$0xff] %v165_v18 }
  0xf5   :  { %v167_v20 = vpop.f32.mrf.mxu0 }
  0xf6   :  { %228 = shalt.err (!%p225_p4)
}
  0xf7   :  { %180 = dma.vmem_to_hbm [thread:$0]  %s178_s13, 128, %s309_s3, [#allocation3]   ;;  %v168_v21 = vpop.f32.mrf.mxu0 }
  0xf8   :  { %237 = dma.done.wait [#allocation3], 128  }
  0xf9   :  { %238 = vsyncadd [#allocation3], 4294967168 }
  0xfa   :  { %184 = vsyncpa [#allocation3], 1 }

</bundles_post_ra>
